<compile_context>
chip_gen: v7x
topology: tpu7x:2x2x1
jax: 0.10.0
libtpu: 0.0.40
codegen_flags: <defaults>
</compile_context>

<pallas_src>
import jax
import jax.numpy as jnp
from jax.experimental import pallas as pl
from jax.experimental.pallas import tpu as pltpu


# ----------------------------------------------------------------------------
# Kernel
# ----------------------------------------------------------------------------
def sepsf_forward_kernel(x_ref, p_ref, q_ref):
    """x_ref: (TB, in_dim) batch tile of concat([state, action]).
    p_ref: (in_dim + 2*hidden + 5, hidden) packed parameter slab, rows:
        [0, in_dim)                    w1
        [in_dim, in_dim+hidden)        w2
        [in_dim+hidden, in_dim+2h)     w3   (cols feat..hidden zero-padded)
        +0: b1   +1: b2   +2: b3(pad)  +3: wq(pad, row vector)  +4: bq (col 0)
    q_ref: (TB, 1) output tile."""
    in_dim = x_ref.shape[1]
    hidden = p_ref.shape[1]
    r_w2 = in_dim
    r_w3 = in_dim + hidden
    r_b = in_dim + 2 * hidden  # bias / vector rows start here

    x = x_ref[...]

    # feature_l1 + relu  (single matmul on the pre-concatenated input)
    h = jnp.dot(x, p_ref[0:r_w2, :], preferred_element_type=jnp.float32)
    h = jnp.maximum(h + p_ref[r_b:r_b + 1, :], 0.0)

    # feature_l2 + relu
    h = jnp.dot(h, p_ref[r_w2:r_w3, :], preferred_element_type=jnp.float32)
    h = jnp.maximum(h + p_ref[r_b + 1:r_b + 2, :], 0.0)

    # feature_l3 + relu  (padded weight/bias columns produce exactly-zero phi lanes)
    phi = jnp.dot(h, p_ref[r_w3:r_b, :], preferred_element_type=jnp.float32)
    phi = jnp.maximum(phi + p_ref[r_b + 2:r_b + 3, :], 0.0)

    # L1 norm over the lane axis (zero-padded lanes contribute nothing)
    l1 = jnp.sum(jnp.abs(phi), axis=-1, keepdims=True) + 1e-6

    # weight_l1 as VPU multiply + lane reduce (an N=1 MXU matmul would waste the
    # whole systolic array), with the L1 division hoisted to one per-row scalar.
    wq = p_ref[r_b + 3:r_b + 4, :]
    bq = p_ref[r_b + 4:r_b + 5, :][:, 0:1]  # (1, 1)
    q_un = jnp.sum(phi * wq, axis=-1, keepdims=True)
    q_ref[...] = (q_un / l1 + bq).astype(q_ref.dtype)


# ----------------------------------------------------------------------------
# Wrapper
# ----------------------------------------------------------------------------
def _round_up(x, m):
    return (x + m - 1) // m * m


def sepsf_forward(state, action, packed_params, *, block_b=512):
    """Q = SepSF.forward(state, action).  state: (B, S), action: (B, A) -> (B, 1)."""
    B = state.shape[0]
    x = jnp.concatenate([state, action], axis=1).astype(jnp.float32)
    in_dim = x.shape[1]
    rows, hidden = packed_params.shape

    # Batch tile: multiple of 8 sublanes; pad the batch so every tile is full.
    tb = min(block_b, _round_up(B, 8))
    b_pad = _round_up(B, tb)
    if b_pad != B:
        x = jnp.pad(x, ((0, b_pad - B), (0, 0)))  # zero rows flow through harmlessly

    q = pl.pallas_call(
        sepsf_forward_kernel,
        out_shape=jax.ShapeDtypeStruct((b_pad, 1), jnp.float32),
        grid_spec=pltpu.PrefetchScalarGridSpec(
            num_scalar_prefetch=0,
            grid=(b_pad // tb,),
            in_specs=[
                pl.BlockSpec((tb, in_dim), lambda i: (i, 0)),      # batch tiles pipeline
                pl.BlockSpec((rows, hidden), lambda i: (0, 0)),    # params: fetched once
            ],
            out_specs=pl.BlockSpec((tb, 1), lambda i: (i, 0)),
        ),
        compiler_params=pltpu.CompilerParams(
            dimension_semantics=("parallel",),   # megacore sharding of the batch axis
        ),
    )(x, packed_params)
    return q[:B]


# ----------------------------------------------------------------------------
# Parameters
# ----------------------------------------------------------------------------
def init_params(key, state_dim, action_dim, feat_dim, hidden_dim):
    """PyTorch-Linear-style init (uniform +-1/sqrt(fan_in)); weights stored (in, out)."""
    def linear(k, fan_in, fan_out):
        kw, kb = jax.random.split(k)
        bound = 1.0 / jnp.sqrt(fan_in)
        w = jax.random.uniform(kw, (fan_in, fan_out), jnp.float32, -bound, bound)
        b = jax.random.uniform(kb, (fan_out,), jnp.float32, -bound, bound)
        return w, b

    k1, k2, k3, k4 = jax.random.split(key, 4)
    in_dim = state_dim + action_dim
    w1, b1 = linear(k1, in_dim, hidden_dim)
    w2, b2 = linear(k2, hidden_dim, hidden_dim)
    w3, b3 = linear(k3, hidden_dim, feat_dim)
    wq, bq = linear(k4, feat_dim, 1)
    return {"w1": w1, "b1": b1, "w2": w2, "b2": b2,
            "w3": w3, "b3": b3, "wq": wq, "bq": bq}


def pack_params(p):
    """Pack all weights/biases into one (in_dim + 2*hidden + 5, hidden) f32 slab."""
    in_dim, hidden = p["w1"].shape
    feat = p["w3"].shape[1]

    def row(v):
        v = jnp.asarray(v, jnp.float32).reshape(1, -1)
        return jnp.pad(v, ((0, 0), (0, hidden - v.shape[1])))

    w3p = jnp.pad(p["w3"].astype(jnp.float32), ((0, 0), (0, hidden - feat)))
    return jnp.concatenate(
        [
            p["w1"].astype(jnp.float32),   # [0, in_dim)
            p["w2"].astype(jnp.float32),   # [in_dim, in_dim+hidden)
            w3p,                           # [in_dim+hidden, in_dim+2*hidden)
            row(p["b1"]),                  # +0
            row(p["b2"]),                  # +1
            row(p["b3"]),                  # +2
            row(p["wq"]),                  # +3  (feat,1) -> row vector, zero-padded
            row(p["bq"]),                  # +4  scalar in column 0
        ],
        axis=0,
    )


# ----------------------------------------------------------------------------
# Pure-JAX reference
# ----------------------------------------------------------------------------
def sepsf_forward_ref(state, action, p):
    x = jnp.concatenate([state, action], axis=1)
    h = jax.nn.relu(x @ p["w1"] + p["b1"])
    h = jax.nn.relu(h @ p["w2"] + p["b2"])
    phi = jax.nn.relu(h @ p["w3"] + p["b3"])
    phi = phi / (jnp.sum(jnp.abs(phi), axis=-1, keepdims=True) + 1e-6)
    return phi @ p["wq"] + p["bq"]


if __name__ == "__main__":
    state_dim, action_dim, feat_dim, hidden_dim = 12, 4, 16, 32
    batch = 8

    key = jax.random.PRNGKey(0)
    kp, ks, ka = jax.random.split(key, 3)
    params = init_params(kp, state_dim, action_dim, feat_dim, hidden_dim)
    packed = pack_params(params)
    state = jax.random.normal(ks, (batch, state_dim), jnp.float32)
    action = jax.random.normal(ka, (batch, action_dim), jnp.float32)

    q = sepsf_forward(state, action, packed)
    q = jax.block_until_ready(q)

    q_ref = sepsf_forward_ref(state, action, params)
    assert q.shape == (batch, 1)
    assert jnp.allclose(q, q_ref, atol=1e-5, rtol=1e-5), "mismatch vs reference"

    print("KERNEL_OK")
</pallas_src>

<mosaic_0001>
module attributes {stable_mosaic.version = 11 : i64} {
  func.func @sepsf_forward_kernel(%arg0: i32, %arg1: memref<8x16xf32, #tpu.memory_space<vmem>>, %arg2: memref<85x32xf32, #tpu.memory_space<vmem>>, %arg3: memref<8x1xf32, #tpu.memory_space<vmem>>) attributes {dimension_semantics = [#tpu.dimension_semantics<parallel>], iteration_bounds = array<i64: 1>, scalar_prefetch = 0 : i64, scratch_operands = 0 : i64, tpu.core_type = #tpu.core_type<tc>, window_params = [{transform_indices = @transform_0, window_bounds = array<i64: 8, 16>}, {pipeline_mode = #tpu.pipeline_mode<synchronous>, transform_indices = @transform_1, window_bounds = array<i64: 85, 32>}, {transform_indices = @transform_2, window_bounds = array<i64: 8, 1>}]} {
    %c0 = arith.constant 0 : index
    %c0_0 = arith.constant 0 : index
    %0 = vector.load %arg1[%c0, %c0_0] : memref<8x16xf32, #tpu.memory_space<vmem>>, vector<8x16xf32>
    %c0_1 = arith.constant 0 : index
    %c0_2 = arith.constant 0 : index
    %1 = vector.load %arg2[%c0_1, %c0_2] : memref<85x32xf32, #tpu.memory_space<vmem>>, vector<16x32xf32>
    %cst = arith.constant dense<0.000000e+00> : vector<8x32xf32>
    %2 = tpu.matmul %0, %1, %cst {dimension_numbers = #tpu.dot_dimension_numbers<[1], [0], [0], [1], [0, 0, 1, 1], [], []>} : vector<8x16xf32>, vector<16x32xf32>, vector<8x32xf32> -> vector<8x32xf32>
    %c80 = arith.constant 80 : index
    %c0_3 = arith.constant 0 : index
    %3 = vector.load %arg2[%c80, %c0_3] : memref<85x32xf32, #tpu.memory_space<vmem>>, vector<1x32xf32>
    %4 = vector.broadcast %3 : vector<1x32xf32> to vector<8x32xf32>
    %5 = arith.addf %2, %4 : vector<8x32xf32>
    %cst_4 = arith.constant 0.000000e+00 : f32
    %6 = vector.broadcast %cst_4 : f32 to vector<8x32xf32>
    %7 = arith.maximumf %5, %6 : vector<8x32xf32>
    %c16 = arith.constant 16 : index
    %c0_5 = arith.constant 0 : index
    %8 = vector.load %arg2[%c16, %c0_5] : memref<85x32xf32, #tpu.memory_space<vmem>>, vector<32x32xf32>
    %cst_6 = arith.constant dense<0.000000e+00> : vector<8x32xf32>
    %9 = tpu.matmul %7, %8, %cst_6 {dimension_numbers = #tpu.dot_dimension_numbers<[1], [0], [0], [1], [0, 0, 1, 1], [], []>} : vector<8x32xf32>, vector<32x32xf32>, vector<8x32xf32> -> vector<8x32xf32>
    %c81 = arith.constant 81 : index
    %c0_7 = arith.constant 0 : index
    %10 = vector.load %arg2[%c81, %c0_7] : memref<85x32xf32, #tpu.memory_space<vmem>>, vector<1x32xf32>
    %11 = vector.broadcast %10 : vector<1x32xf32> to vector<8x32xf32>
    %12 = arith.addf %9, %11 : vector<8x32xf32>
    %cst_8 = arith.constant 0.000000e+00 : f32
    %13 = vector.broadcast %cst_8 : f32 to vector<8x32xf32>
    %14 = arith.maximumf %12, %13 : vector<8x32xf32>
    %c48 = arith.constant 48 : index
    %c0_9 = arith.constant 0 : index
    %15 = vector.load %arg2[%c48, %c0_9] : memref<85x32xf32, #tpu.memory_space<vmem>>, vector<32x32xf32>
    %cst_10 = arith.constant dense<0.000000e+00> : vector<8x32xf32>
    %16 = tpu.matmul %14, %15, %cst_10 {dimension_numbers = #tpu.dot_dimension_numbers<[1], [0], [0], [1], [0, 0, 1, 1], [], []>} : vector<8x32xf32>, vector<32x32xf32>, vector<8x32xf32> -> vector<8x32xf32>
    %c82 = arith.constant 82 : index
    %c0_11 = arith.constant 0 : index
    %17 = vector.load %arg2[%c82, %c0_11] : memref<85x32xf32, #tpu.memory_space<vmem>>, vector<1x32xf32>
    %18 = vector.broadcast %17 : vector<1x32xf32> to vector<8x32xf32>
    %19 = arith.addf %16, %18 : vector<8x32xf32>
    %cst_12 = arith.constant 0.000000e+00 : f32
    %20 = vector.broadcast %cst_12 : f32 to vector<8x32xf32>
    %21 = arith.maximumf %19, %20 : vector<8x32xf32>
    %22 = math.absf %21 : vector<8x32xf32>
    %cst_13 = arith.constant dense<0.000000e+00> : vector<8xf32>
    %23 = vector.multi_reduction <add>, %22, %cst_13 [1] : vector<8x32xf32> to vector<8xf32>
    %24 = vector.shape_cast %23 : vector<8xf32> to vector<8x1xf32>
    %cst_14 = arith.constant 9.99999997E-7 : f32
    %25 = vector.broadcast %cst_14 : f32 to vector<8x1xf32>
    %26 = arith.addf %24, %25 : vector<8x1xf32>
    %c83 = arith.constant 83 : index
    %c0_15 = arith.constant 0 : index
    %27 = vector.load %arg2[%c83, %c0_15] : memref<85x32xf32, #tpu.memory_space<vmem>>, vector<1x32xf32>
    %c84 = arith.constant 84 : index
    %c0_16 = arith.constant 0 : index
    %28 = vector.load %arg2[%c84, %c0_16] : memref<85x32xf32, #tpu.memory_space<vmem>>, vector<1x32xf32>
    %29 = vector.extract_strided_slice %28 {offsets = [0, 0], sizes = [1, 1], strides = [1, 1]} : vector<1x32xf32> to vector<1x1xf32>
    %30 = vector.broadcast %27 : vector<1x32xf32> to vector<8x32xf32>
    %31 = arith.mulf %21, %30 : vector<8x32xf32>
    %cst_17 = arith.constant dense<0.000000e+00> : vector<8xf32>
    %32 = vector.multi_reduction <add>, %31, %cst_17 [1] : vector<8x32xf32> to vector<8xf32>
    %33 = vector.shape_cast %32 : vector<8xf32> to vector<8x1xf32>
    %34 = arith.divf %33, %26 : vector<8x1xf32>
    %35 = vector.broadcast %29 : vector<1x1xf32> to vector<8x1xf32>
    %36 = arith.addf %34, %35 : vector<8x1xf32>
    %c0_18 = arith.constant 0 : index
    %c0_19 = arith.constant 0 : index
    %37 = vector.load %arg3[%c0_18, %c0_19] : memref<8x1xf32, #tpu.memory_space<vmem>>, vector<8x1xf32>
    tpu.vector_store %arg3[%c0_18, %c0_19], %36 {strides = array<i32>} : memref<8x1xf32, #tpu.memory_space<vmem>>, vector<8x1xf32>,
    return
  }
  func.func @transform_0(%arg0: i32) -> (i32, i32) {
    %c0_i32 = arith.constant 0 : i32
    %c0_i32_0 = arith.constant 0 : i32
    return %arg0, %c0_i32 : i32, i32
  }
  func.func @transform_1(%arg0: i32) -> (i32, i32) {
    %c0_i32 = arith.constant 0 : i32
    %c0_i32_0 = arith.constant 0 : i32
    %c0_i32_1 = arith.constant 0 : i32
    return %c0_i32, %c0_i32_0 : i32, i32
  }
  func.func @transform_2(%arg0: i32) -> (i32, i32) {
    %c0_i32 = arith.constant 0 : i32
    %c0_i32_0 = arith.constant 0 : i32
    return %arg0, %c0_i32 : i32, i32
  }
}

</mosaic_0001>

<bundles_post_ra>
// kernel: tpu_custom_call.1
= control target key start
LH: loop header
LB: loop body
LE: loop exit
PB: predicated region body
PF: predicated region fallthrough
CT: control target
= control target key end

     0   :  { %v359_v0 = vmov 0.0|0.0   ;;  %vm360_vm0 = vmmov 0   ;;  %v361_v3 = vmov 0.0   ;;  %vm19_vm1 = vcmask 130048   ;;  %s435_s1 = inlined_call_operand.vmem [shape: f32[85,32], index: 1, kind: input, shape index: {}]   ;;  %s436_s0 = inlined_call_operand.vmem [shape: f32[8,16], index: 0, kind: input, shape index: {}]   ;;  %s437_s2 = inlined_call_operand.vmem [shape: f32[8,1], index: 2, kind: output, shape index: {}]  }
   0x1   :  { %339 = vmatprep.subr.bf16.mxu0 %v359_v0  ;;  %v12_v1 = vld [vmem:[%s435_s1] sm:$0xff]  ;;  %v13_v2 = vld [vmem:[%s435_s1 + $0x8] sm:$0xff]  ;;  %314 = vmatprep.mubr.msk.f32.mxu0 %vm360_vm0, %v361_v3  ;;  %v94_v5 = vld [vmem:[%s435_s1 + $0x10] sm:$0xff]  ;;  %vm103_vm2 = vcmask 261120   ;;  %vm283_vm3 = vcmask 7168  }
   0x2   :  { %v340_v4 = vpack.c.bf16 %v13_v2, %v12_v1  ;;  %342 = vmatprep.subr.bf16.mxu1 %v359_v0  ;;  %v95_v6 = vld [vmem:[%s435_s1 + $0x18] sm:$0xff]  ;;  %325 = vmatprep.mubr.msk.f32.mxu1 %vm360_vm0, %v361_v3  ;;  %v11_v8 = vld [vmem:[%s436_s0] sm:$0xff]  ;;  %v97_v10 = vld [vmem:[%s435_s1 + $0x28] sm:$0xff] }
   0x3   :  { %v343_v7 = vpack.c.bf16 %v95_v6, %v94_v5  ;;  %v96_v9 = vld [vmem:[%s435_s1 + $0x20] sm:$0xff]  ;;  %v178_v12 = vld [vmem:[%s435_s1 + $0x30] sm:$0xff]  ;;  %v179_v13 = vld [vmem:[%s435_s1 + $0x38] sm:$0xff] }
   0x4   :  { %341 = vmatpush3.bf16.msra.mxu0 %v340_v4  ;;  %v346_v11 = vpack.c.bf16 %v97_v10, %v96_v9  ;;  %v349_v14 = vpack.c.bf16 %v179_v13, %v178_v12  ;;  %v289_v15 = vld [vmem:[%s435_s1 + $0x50] ss:$0 sm:$0xff]  ;;  %v180_v20 = vld [vmem:[%s435_s1 + $0x40] sm:$0xff]  ;;  %v181_v21 = vld [vmem:[%s435_s1 + $0x48] sm:$0xff] }
   0x5   :  { %344 = vmatpush3.bf16.msra.mxu1 %v343_v7  ;;  %348 = vmatprep.subr.bf16.mxu0 %v359_v0  ;;  %v352_v22 = vpack.c.bf16 %v181_v21, %v180_v20  ;;  %v291_v23 = vld [vmem:[%s435_s1 + $0x51] ss:$0 sm:$0xff]  ;;  %v293_v28 = vld [vmem:[%s435_s1 + $0x52] ss:$0 sm:$0xff]  ;;  %v295_v33 = vld [vmem:[%s435_s1 + $0x53] ss:$0 sm:$0xff] }
   0x6   :  { %345 = vmatprep.subr.bf16.mxu1 %v359_v0  ;;  %v296_v41 = vld [vmem:[%s435_s1 + $0x54] ss:$0 sm:$0xff] }
   0x7   :  { %315 = vmatmul.mubr.msk.f32.vlgmr.msra.gmra.mrb[0].mxu0 %vm19_vm1, %v11_v8 }
   0x8   :  { %336 = vmatprep.mubr.msk.f32.mxu0 %vm360_vm0, %v361_v3  ;;  %350 = vmatpush3.bf16.msra.mxu0 %v349_v14 }
   0x9   :  { %347 = vmatpush3.bf16.msra.mxu1 %v346_v11  ;;  %351 = vmatprep.subr.bf16.mxu0 %v359_v0 }
   0xc   :  { %353 = vmatpush3.bf16.msra.mxu0 %v352_v22 }
  0xda   :  { %v89_v16 = vpop.f32.mrb[0].mxu0 }
  0xdb   :  { %v90_v17 = vadd.f32 %v289_v15, %v89_v16  ;;  %v316_v18 = vpop.f32.mrb[1].mxu0 }
  0xdd   :  { %v93_v19 = vmax.f32 %v90_v17, 0.0 }
  0xdf   :  { %326 = vmatmul.mubr.msk.f32.vlgmr.msra.gmra.mrb[0].mxu1 %vm103_vm2, %v93_v19 }
 0x1b2   :  { %v173_v24 = vpop.f32.mrb[0].mxu1 }
 0x1b3   :  { %v174_v25 = vadd.f32 %v291_v23, %v173_v24  ;;  %v327_v26 = vpop.f32.mrb[1].mxu1 }
 0x1b5   :  { %v177_v27 = vmax.f32 %v174_v25, 0.0 }
 0x1b7   :  { %337 = vmatmul.mubr.msk.f32.vlgmr.msra.gmra.mrb[2].mxu0 %vm103_vm2, %v177_v27 }
 0x28a   :  { %v256_v29 = vpop.f32.mrb[2].mxu0 }
 0x28b   :  { %v257_v30 = vadd.f32 %v293_v28, %v256_v29  ;;  %v338_v31 = vpop.f32.mrb[3].mxu0 }
 0x28d   :  { %v260_v32 = vmax.f32 %v257_v30, 0.0 }
 0x28f   :  { %v261_v34 = vand.u32 2147483647, %v260_v32  ;;  %v272_v36 = vmul.f32 %v295_v33, %v260_v32 }
 0x291   :  { %v262_v35 = vsel %vm103_vm2, %v261_v34, 0.0  ;;  %v273_v37 = vsel %vm103_vm2, %v272_v36, 0.0 }
 0x292   :  { %263 = vadd.xlane.f32.xlu0 %v262_v35 }
 0x296   :  { %274 = vadd.xlane.f32.xlu0 %v273_v37 }
 0x31f   :  { %v264_v38 = vpop.xlane.xlu0 %263 }
 0x320   :  { %v265_v39 = vadd.f32 1e-06, %v264_v38 }
 0x322   :  { %357 = vrcp.f32 %v265_v39 }
 0x323   :  { %v275_v42 = vpop.xlane.xlu0 %274 }
 0x32c   :  { %v358_v40 = vpop.eup %357 }
 0x32d   :  { %v277_v43 = vmul.f32 %v358_v40, %v275_v42 }
 0x32f   :  { %v282_v44 = vadd.f32 %v296_v41, %v277_v43 }
 0x331   :  { %284 = vst.msk [vmem:[%s437_s2] sm:$0xff] %vm283_vm3, %v282_v44 }

</bundles_post_ra>
